<compile_context>
chip_gen: v6e
topology: v6e:2x2x1
jax: 0.10.0
libtpu: 0.0.40
codegen_flags: <defaults>
</compile_context>

<pallas_src>
import jax
import jax.numpy as jnp
from jax.experimental import pallas as pl
from jax.experimental.pallas import tpu as pltpu


# ------------------------------ helpers ------------------------------------ #
def _round_up(x, m):
    return (x + m - 1) // m * m


def _erf_approx(x):
    # Abramowitz & Stegun 7.1.26, max abs error ~1.5e-7 (f32 friendly).
    ax = jnp.abs(x)
    t = 1.0 / (1.0 + 0.3275911 * ax)
    poly = ((((1.061405429 * t - 1.453152027) * t + 1.421413741) * t
             - 0.284496736) * t + 0.254829592) * t
    y = 1.0 - poly * jnp.exp(-(ax * ax))
    return jnp.where(x < 0.0, -y, y)


def _gelu_exact(x):
    # 0.5 * x * (1 + erf(x / sqrt(2)))  — PyTorch nn.GELU default.
    return 0.5 * x * (1.0 + _erf_approx(x * 0.7071067811865476))


def _choose_tm(M, Ep, FFp, itemsize):
    """VMEM-budgeted row tile.  Conservative so it also fits v5e's 16 MiB
    default scoped VMEM without flag overrides."""
    budget = 14 * 1024 * 1024
    # Resident (double-buffered) weights + biases.
    fixed = 2 * (2 * Ep * FFp + Ep + FFp) * itemsize
    # Per-row: double-buffered x / residual / out tiles + f32 hidden row.
    per_row = 2 * 3 * Ep * itemsize + 4 * FFp
    avail = budget - fixed
    tm = avail // per_row if avail > 0 else 8
    align = 16 if itemsize == 2 else 8          # bf16 sublane packing
    tm = max(align, min(1024, (tm // align) * align))
    tm = min(tm, _round_up(M, align))
    return int(tm)


# ----------------------------- Pallas kernel ------------------------------- #
def _elastic_ffn_kernel(x_ref, w1_ref, b1_ref, w2_ref, b2_ref, *rest):
    if len(rest) == 2:
        r_ref, o_ref = rest
    else:
        (o_ref,) = rest
        r_ref = None

    x = x_ref[...]
    # layer1 + bias (f32 accumulate on the MXU)
    h = jnp.dot(x, w1_ref[...], preferred_element_type=jnp.float32)
    h = h + b1_ref[...].astype(jnp.float32)
    # exact GELU (VPU/EUP)
    h = _gelu_exact(h)
    # layer2 + bias
    out = jnp.dot(h.astype(w2_ref.dtype), w2_ref[...],
                  preferred_element_type=jnp.float32)
    out = out + b2_ref[...].astype(jnp.float32)
    # residual add (fused, no extra HBM pass)
    if r_ref is not None:
        out = out + r_ref[...].astype(jnp.float32)
    o_ref[...] = out.astype(o_ref.dtype)


# -------------------------------- wrapper ----------------------------------- #
def elastic_ffn(x, w1, b1, w2, b2, residual=None, *, add_residual=True):
    """ElasticFFN forward.

    x:        (B, S, E)
    w1:       (FF, E)   PyTorch nn.Linear layout (out_features, in_features)
    b1:       (FF,)
    w2:       (E, FF)
    b2:       (E,)
    residual: (B, S, E) or None (defaults to x when add_residual)
    Returns   (B, S, E)
    """
    B, S, E = x.shape
    FF = w1.shape[0]
    M = B * S
    itemsize = jnp.dtype(x.dtype).itemsize

    if add_residual and residual is None:
        residual = x

    # Lane-dense feature dims (multiples of 128); no-op for realistic dims.
    Ep = _round_up(E, 128)
    FFp = _round_up(FF, 128)

    # (B, S, E) -> (M, E): pure metadata reshape, no HBM transpose.
    x2 = x.reshape(M, E)
    r2 = residual.reshape(M, E) if add_residual else None

    w1_t = w1.T  # (E, FF)
    w2_t = w2.T  # (FF, E)

    if Ep != E:
        x2 = jnp.pad(x2, ((0, 0), (0, Ep - E)))
        if r2 is not None:
            r2 = jnp.pad(r2, ((0, 0), (0, Ep - E)))
        b2v = jnp.pad(b2, (0, Ep - E))
    else:
        b2v = b2
    b1v = jnp.pad(b1, (0, FFp - FF)) if FFp != FF else b1
    if Ep != E or FFp != FF:
        w1_t = jnp.pad(w1_t, ((0, Ep - E), (0, FFp - FF)))
        w2_t = jnp.pad(w2_t, ((0, FFp - FF), (0, Ep - E)))
    b1v = b1v.reshape(1, FFp)
    b2v = b2v.reshape(1, Ep)

    tm = _choose_tm(M, Ep, FFp, itemsize)
    grid = (pl.cdiv(M, tm),)

    in_specs = [
        pl.BlockSpec((tm, Ep), lambda i: (i, 0)),    # x rows
        pl.BlockSpec((Ep, FFp), lambda i: (0, 0)),   # W1 (resident)
        pl.BlockSpec((1, FFp), lambda i: (0, 0)),    # b1
        pl.BlockSpec((FFp, Ep), lambda i: (0, 0)),   # W2 (resident)
        pl.BlockSpec((1, Ep), lambda i: (0, 0)),     # b2
    ]
    inputs = [x2, w1_t, b1v, w2_t, b2v]
    if add_residual:
        in_specs.append(pl.BlockSpec((tm, Ep), lambda i: (i, 0)))
        inputs.append(r2)

    n_streams = 3 if add_residual else 2
    cost = pl.CostEstimate(
        flops=int(4 * M * Ep * FFp),
        transcendentals=int(M * FFp),
        bytes_accessed=int((n_streams * M * Ep + 2 * Ep * FFp + Ep + FFp)
                           * itemsize),
    )

    out_p = pl.pallas_call(
        _elastic_ffn_kernel,
        out_shape=jax.ShapeDtypeStruct((M, Ep), x.dtype),
        grid_spec=pltpu.PrefetchScalarGridSpec(
            num_scalar_prefetch=0,
            grid=grid,
            in_specs=in_specs,
            out_specs=pl.BlockSpec((tm, Ep), lambda i: (i, 0)),
        ),
        compiler_params=pltpu.CompilerParams(
            dimension_semantics=("parallel",)),
        cost_estimate=cost,
    )(*inputs)

    if Ep != E:
        out_p = out_p[:, :E]
    return out_p.reshape(B, S, E)


# ------------------------------- reference ---------------------------------- #
def _reference(x, w1, b1, w2, b2, residual=None, *, add_residual=True):
    h = jnp.einsum("bse,fe->bsf", x, w1) + b1
    h = jax.nn.gelu(h, approximate=False)      # exact erf GELU (PyTorch default)
    out = jnp.einsum("bsf,ef->bse", h, w2) + b2
    if add_residual:
        out = out + (x if residual is None else residual)
    return out


# --------------------------------- main ------------------------------------- #
if __name__ == "__main__":
    # Small shapes consistent with the module: batch=2, seq=8, embed_dim=32,
    # feedforward_channels=128.
    B, S, E, FF = 2, 8, 32, 128

    key = jax.random.PRNGKey(0)
    kx, kr, kw1, kb1, kw2, kb2 = jax.random.split(key, 6)

    x = jax.random.normal(kx, (B, S, E), dtype=jnp.float32)
    residual = jax.random.normal(kr, (B, S, E), dtype=jnp.float32)

    w1 = jax.random.normal(kw1, (FF, E), dtype=jnp.float32) / jnp.sqrt(
        jnp.float32(E))
    b1 = jax.random.normal(kb1, (FF,), dtype=jnp.float32) * 0.02
    w2 = jax.random.normal(kw2, (E, FF), dtype=jnp.float32) / jnp.sqrt(
        jnp.float32(FF))
    b2 = jax.random.normal(kb2, (E,), dtype=jnp.float32) * 0.02

    out = elastic_ffn(x, w1, b1, w2, b2, residual, add_residual=True)
    out = jax.block_until_ready(out)

    ref = _reference(x, w1, b1, w2, b2, residual, add_residual=True)
    assert out.shape == (B, S, E)
    max_err = float(jnp.max(jnp.abs(out - ref)))
    assert jnp.allclose(out, ref, atol=2e-3, rtol=2e-3), max_err

    print("KERNEL_OK")
</pallas_src>

<mosaic_0001>
module attributes {stable_mosaic.version = 11 : i64} {
  func.func @_elastic_ffn_kernel(%arg0: i32, %arg1: memref<16x128xf32, #tpu.memory_space<vmem>>, %arg2: memref<128x128xf32, #tpu.memory_space<vmem>>, %arg3: memref<1x128xf32, #tpu.memory_space<vmem>>, %arg4: memref<128x128xf32, #tpu.memory_space<vmem>>, %arg5: memref<1x128xf32, #tpu.memory_space<vmem>>, %arg6: memref<16x128xf32, #tpu.memory_space<vmem>>, %arg7: memref<16x128xf32, #tpu.memory_space<vmem>>) attributes {dimension_semantics = [#tpu.dimension_semantics<parallel>], iteration_bounds = array<i64: 1>, scalar_prefetch = 0 : i64, scratch_operands = 0 : i64, tpu.core_type = #tpu.core_type<tc>, window_params = [{transform_indices = @transform_0, window_bounds = array<i64: 16, 128>}, {pipeline_mode = #tpu.pipeline_mode<synchronous>, transform_indices = @transform_1, window_bounds = array<i64: 128, 128>}, {pipeline_mode = #tpu.pipeline_mode<synchronous>, transform_indices = @transform_2, window_bounds = array<i64: 1, 128>}, {pipeline_mode = #tpu.pipeline_mode<synchronous>, transform_indices = @transform_3, window_bounds = array<i64: 128, 128>}, {pipeline_mode = #tpu.pipeline_mode<synchronous>, transform_indices = @transform_4, window_bounds = array<i64: 1, 128>}, {transform_indices = @transform_5, window_bounds = array<i64: 16, 128>}, {transform_indices = @transform_6, window_bounds = array<i64: 16, 128>}]} {
    %c0 = arith.constant 0 : index
    %c0_0 = arith.constant 0 : index
    %0 = vector.load %arg1[%c0, %c0_0] : memref<16x128xf32, #tpu.memory_space<vmem>>, vector<16x128xf32>
    %c0_1 = arith.constant 0 : index
    %c0_2 = arith.constant 0 : index
    %1 = vector.load %arg2[%c0_1, %c0_2] : memref<128x128xf32, #tpu.memory_space<vmem>>, vector<128x128xf32>
    %cst = arith.constant dense<0.000000e+00> : vector<16x128xf32>
    %2 = tpu.matmul %0, %1, %cst {dimension_numbers = #tpu.dot_dimension_numbers<[1], [0], [0], [1], [0, 0, 1, 1], [], []>} : vector<16x128xf32>, vector<128x128xf32>, vector<16x128xf32> -> vector<16x128xf32>
    %c0_3 = arith.constant 0 : index
    %c0_4 = arith.constant 0 : index
    %3 = vector.load %arg3[%c0_3, %c0_4] : memref<1x128xf32, #tpu.memory_space<vmem>>, vector<1x128xf32>
    %4 = vector.broadcast %3 : vector<1x128xf32> to vector<16x128xf32>
    %5 = arith.addf %2, %4 : vector<16x128xf32>
    %cst_5 = arith.constant 5.000000e-01 : f32
    %6 = vector.broadcast %cst_5 : f32 to vector<16x128xf32>
    %7 = arith.mulf %6, %5 : vector<16x128xf32>
    %cst_6 = arith.constant 0.707106769 : f32
    %8 = vector.broadcast %cst_6 : f32 to vector<16x128xf32>
    %9 = arith.mulf %5, %8 : vector<16x128xf32>
    %10 = math.absf %9 : vector<16x128xf32>
    %cst_7 = arith.constant 0.327591091 : f32
    %11 = vector.broadcast %cst_7 : f32 to vector<16x128xf32>
    %12 = arith.mulf %11, %10 : vector<16x128xf32>
    %cst_8 = arith.constant 1.000000e+00 : f32
    %13 = vector.broadcast %cst_8 : f32 to vector<16x128xf32>
    %14 = arith.addf %13, %12 : vector<16x128xf32>
    %cst_9 = arith.constant 1.000000e+00 : f32
    %15 = vector.broadcast %cst_9 : f32 to vector<16x128xf32>
    %16 = arith.divf %15, %14 : vector<16x128xf32>
    %cst_10 = arith.constant 1.06140542 : f32
    %17 = vector.broadcast %cst_10 : f32 to vector<16x128xf32>
    %18 = arith.mulf %17, %16 : vector<16x128xf32>
    %cst_11 = arith.constant 1.45315206 : f32
    %19 = vector.broadcast %cst_11 : f32 to vector<16x128xf32>
    %20 = arith.subf %18, %19 : vector<16x128xf32>
    %21 = arith.mulf %20, %16 : vector<16x128xf32>
    %cst_12 = arith.constant 1.42141378 : f32
    %22 = vector.broadcast %cst_12 : f32 to vector<16x128xf32>
    %23 = arith.addf %21, %22 : vector<16x128xf32>
    %24 = arith.mulf %23, %16 : vector<16x128xf32>
    %cst_13 = arith.constant 0.284496725 : f32
    %25 = vector.broadcast %cst_13 : f32 to vector<16x128xf32>
    %26 = arith.subf %24, %25 : vector<16x128xf32>
    %27 = arith.mulf %26, %16 : vector<16x128xf32>
    %cst_14 = arith.constant 0.254829586 : f32
    %28 = vector.broadcast %cst_14 : f32 to vector<16x128xf32>
    %29 = arith.addf %27, %28 : vector<16x128xf32>
    %30 = arith.mulf %29, %16 : vector<16x128xf32>
    %31 = arith.mulf %10, %10 : vector<16x128xf32>
    %cst_15 = arith.constant 0.000000e+00 : f32
    %32 = vector.broadcast %cst_15 : f32 to vector<16x128xf32>
    %33 = arith.subf %32, %31 : vector<16x128xf32>
    %34 = math.exp %33 : vector<16x128xf32>
    %35 = arith.mulf %30, %34 : vector<16x128xf32>
    %cst_16 = arith.constant 1.000000e+00 : f32
    %36 = vector.broadcast %cst_16 : f32 to vector<16x128xf32>
    %37 = arith.subf %36, %35 : vector<16x128xf32>
    %cst_17 = arith.constant 0.000000e+00 : f32
    %38 = vector.broadcast %cst_17 : f32 to vector<16x128xf32>
    %39 = arith.cmpf olt, %9, %38 : vector<16x128xf32>
    %cst_18 = arith.constant 0.000000e+00 : f32
    %40 = vector.broadcast %cst_18 : f32 to vector<16x128xf32>
    %41 = arith.subf %40, %37 : vector<16x128xf32>
    %42 = arith.select %39, %41, %37 : vector<16x128xi1>, vector<16x128xf32>
    %cst_19 = arith.constant 1.000000e+00 : f32
    %43 = vector.broadcast %cst_19 : f32 to vector<16x128xf32>
    %44 = arith.addf %43, %42 : vector<16x128xf32>
    %45 = arith.mulf %7, %44 : vector<16x128xf32>
    %c0_20 = arith.constant 0 : index
    %c0_21 = arith.constant 0 : index
    %46 = vector.load %arg4[%c0_20, %c0_21] : memref<128x128xf32, #tpu.memory_space<vmem>>, vector<128x128xf32>
    %cst_22 = arith.constant dense<0.000000e+00> : vector<16x128xf32>
    %47 = tpu.matmul %45, %46, %cst_22 {dimension_numbers = #tpu.dot_dimension_numbers<[1], [0], [0], [1], [0, 0, 1, 1], [], []>} : vector<16x128xf32>, vector<128x128xf32>, vector<16x128xf32> -> vector<16x128xf32>
    %c0_23 = arith.constant 0 : index
    %c0_24 = arith.constant 0 : index
    %48 = vector.load %arg5[%c0_23, %c0_24] : memref<1x128xf32, #tpu.memory_space<vmem>>, vector<1x128xf32>
    %49 = vector.broadcast %48 : vector<1x128xf32> to vector<16x128xf32>
    %50 = arith.addf %47, %49 : vector<16x128xf32>
    %c0_25 = arith.constant 0 : index
    %c0_26 = arith.constant 0 : index
    %51 = vector.load %arg6[%c0_25, %c0_26] : memref<16x128xf32, #tpu.memory_space<vmem>>, vector<16x128xf32>
    %52 = arith.addf %50, %51 : vector<16x128xf32>
    %c0_27 = arith.constant 0 : index
    %c0_28 = arith.constant 0 : index
    %53 = vector.load %arg7[%c0_27, %c0_28] : memref<16x128xf32, #tpu.memory_space<vmem>>, vector<16x128xf32>
    tpu.vector_store %arg7[%c0_27, %c0_28], %52 {strides = array<i32>} : memref<16x128xf32, #tpu.memory_space<vmem>>, vector<16x128xf32>,
    return
  }
  func.func @transform_0(%arg0: i32) -> (i32, i32) {
    %c0_i32 = arith.constant 0 : i32
    %c0_i32_0 = arith.constant 0 : i32
    return %arg0, %c0_i32 : i32, i32
  }
  func.func @transform_1(%arg0: i32) -> (i32, i32) {
    %c0_i32 = arith.constant 0 : i32
    %c0_i32_0 = arith.constant 0 : i32
    %c0_i32_1 = arith.constant 0 : i32
    return %c0_i32, %c0_i32_0 : i32, i32
  }
  func.func @transform_2(%arg0: i32) -> (i32, i32) {
    %c0_i32 = arith.constant 0 : i32
    %c0_i32_0 = arith.constant 0 : i32
    %c0_i32_1 = arith.constant 0 : i32
    return %c0_i32, %c0_i32_0 : i32, i32
  }
  func.func @transform_3(%arg0: i32) -> (i32, i32) {
    %c0_i32 = arith.constant 0 : i32
    %c0_i32_0 = arith.constant 0 : i32
    %c0_i32_1 = arith.constant 0 : i32
    return %c0_i32, %c0_i32_0 : i32, i32
  }
  func.func @transform_4(%arg0: i32) -> (i32, i32) {
    %c0_i32 = arith.constant 0 : i32
    %c0_i32_0 = arith.constant 0 : i32
    %c0_i32_1 = arith.constant 0 : i32
    return %c0_i32, %c0_i32_0 : i32, i32
  }
  func.func @transform_5(%arg0: i32) -> (i32, i32) {
    %c0_i32 = arith.constant 0 : i32
    %c0_i32_0 = arith.constant 0 : i32
    return %arg0, %c0_i32 : i32, i32
  }
  func.func @transform_6(%arg0: i32) -> (i32, i32) {
    %c0_i32 = arith.constant 0 : i32
    %c0_i32_0 = arith.constant 0 : i32
    return %arg0, %c0_i32 : i32, i32
  }
}

</mosaic_0001>

<bundles_post_ra>
// kernel: tpu_custom_call.1
= control target key start
LH: loop header
LB: loop body
LE: loop exit
PB: predicated region body
PF: predicated region fallthrough
CT: control target
= control target key end

     0   :  { %11 = vsyncpa [#allocation3], 0  ;;  %s669_s0 = inlined_call_operand.hbm [shape: f32[16,128], index: 0, kind: input, shape index: {}]   ;;  %s670_s1 = inlined_call_operand.hbm [shape: f32[128,128], index: 1, kind: input, shape index: {}]   ;;  %s671_s2 = inlined_call_operand.vmem [shape: f32[1,128], index: 2, kind: input, shape index: {}]   ;;  %s672_s3 = inlined_call_operand.hbm [shape: f32[128,128], index: 3, kind: input, shape index: {}]   ;;  %s673_s4 = inlined_call_operand.vmem [shape: f32[1,128], index: 4, kind: input, shape index: {}]   ;;  %s674_s5 = inlined_call_operand.hbm [shape: f32[16,128], index: 5, kind: input, shape index: {}]   ;;  %s675_s6 = inlined_call_operand.hbm [shape: f32[16,128], index: 6, kind: output, shape index: {}]  }
   0x1   :  { %12 = vsyncpa [#allocation6], 0 }
   0x2   :  { %13 = vsyncpa [#allocation9], 0 }
   0x3   :  { %14 = vsyncpa [#allocation4], 0  ;;  %s591_s21 = smov [#allocation5]   ;;  %s592_s23 = smov [#allocation2]  }
   0x4   :  { %s32_s22 = sshll.u32 %s591_s21, 4  ;;  %s20_s24 = sshll.u32 %s592_s23, 4  ;;  %s33_s22 = int_to_ptr.vmem [resolvable:$true] %s32_s22  ;;  %s21_s24 = int_to_ptr.vmem [resolvable:$true] %s20_s24 }
   0x5   :  { %s491_s25 = scalar_lea.vmem %s33_s22, 2048  ;;  %p496_p1 = scmp.lt.s32.totalorder %s33_s22, %s33_s22 }
   0x6   :  { %p492_p0 = scmp.ne.s32.totalorder %s33_s22, %s491_s25  ;;  %p497_p2 = scmp.lt.s32.totalorder %s491_s25, %s491_s25 }
   0x8   :  { %p498_p3 = por %p497_p2, %p496_p1 }
   0xa   :  { %p499_p4 = pnand %p498_p3, %p492_p0 }
   0xc   :  { %502 = shalt.err (!%p499_p4)
}
   0xd   :  { %s593_s26 = smov 128   ;;  %s594_s27 = smov 8  }
   0xe   :  { %38 = dma.hbm_to_vmem [thread:$0]  %s670_s1, 2048, %s33_s22, [#allocation6], %s593_s26, %s593_s26, %s594_s27  }
   0xf   :  { %s511_s30 = scalar_lea.vmem %s21_s24, 256  ;;  %p516_p6 = scmp.lt.s32.totalorder %s21_s24, %s21_s24 }
  0x10   :  { %p512_p5 = scmp.ne.s32.totalorder %s21_s24, %s511_s30  ;;  %p517_p7 = scmp.lt.s32.totalorder %s511_s30, %s511_s30 }
  0x12   :  { %p518_p8 = por %p517_p7, %p516_p6 }
  0x14   :  { %p519_p9 = pnand %p518_p8, %p512_p5 }
  0x16   :  { %522 = shalt.err (!%p519_p9)
}
  0x17   :  { %26 = dma.hbm_to_vmem [thread:$0]  %s669_s0, 256, %s21_s24, [#allocation3], %s593_s26, %s593_s26, %s594_s27  }
  0x18   :  { %s595_s9 = smov [#allocation7]   ;;  %s596_s11 = smov [#allocation8]  }
  0x19   :  { %s46_s10 = sshll.u32 %s595_s9, 4  ;;  %s60_s12 = sshll.u32 %s596_s11, 4  ;;  %s47_s10 = int_to_ptr.vmem [resolvable:$true] %s46_s10  ;;  %s61_s12 = int_to_ptr.vmem [resolvable:$true] %s60_s12 }
  0x1a   :  { %s531_s1 = scalar_lea.vmem %s47_s10, 2048  ;;  %p536_p11 = scmp.lt.s32.totalorder %s47_s10, %s47_s10 }
  0x1b   :  { %p532_p10 = scmp.ne.s32.totalorder %s47_s10, %s531_s1  ;;  %p537_p12 = scmp.lt.s32.totalorder %s531_s1, %s531_s1 }
  0x1d   :  { %p538_p13 = por %p537_p12, %p536_p11 }
  0x1f   :  { %p539_p0 = pnand %p538_p13, %p532_p10 }
  0x21   :  { %542 = shalt.err (!%p539_p0)
}
  0x22   :  { %52 = dma.hbm_to_vmem [thread:$0]  %s672_s3, 2048, %s47_s10, [#allocation6], %s593_s26, %s593_s26, %s594_s27  }
  0x23   :  { %s551_s0 = scalar_lea.vmem %s61_s12, 256  ;;  %p556_p2 = scmp.lt.s32.totalorder %s61_s12, %s61_s12 }
  0x24   :  { %p552_p1 = scmp.ne.s32.totalorder %s61_s12, %s551_s0  ;;  %p557_p3 = scmp.lt.s32.totalorder %s551_s0, %s551_s0 }
  0x26   :  { %p558_p4 = por %p557_p3, %p556_p2 }
  0x28   :  { %p559_p5 = pnand %p558_p4, %p552_p1 }
  0x2a   :  { %562 = shalt.err (!%p559_p5)
}
  0x2b   :  { %66 = dma.hbm_to_vmem [thread:$0]  %s674_s5, 256, %s61_s12, [#allocation9], %s593_s26, %s593_s26, %s594_s27  }
  0x2c   :  { %583 = dma.done.wait [#allocation3], 256  }
  0x2d   :  { %584 = vsyncadd [#allocation3], 4294967040 }
  0x2e   :  { %585 = dma.done.wait [#allocation6], 4096  }
  0x2f   :  { %586 = vsyncadd [#allocation6], 4294963200 }
  0x30   :  { %587 = dma.done.wait [#allocation9], 256  }
  0x31   :  { %588 = vsyncadd [#allocation9], 4294967040  ;;  %v96_v0 = vld [vmem:[#allocation5 + $0x78] sm:$0xff]  ;;  %v95_v1 = vld [vmem:[#allocation5 + $0x70] sm:$0xff]  ;;  %s597_s18 = smov [#allocation10]  }
  0x32   :  { %398 = vmatprep.subr.mxu0 %v96_v0  ;;  %v94_v2 = vld [vmem:[#allocation5 + $0x68] sm:$0xff]  ;;  %v93_v3 = vld [vmem:[#allocation5 + $0x60] sm:$0xff]  ;;  %v79_v4 = vld [vmem:[#allocation2] sm:$0xff]  ;;  %s342_s19 = sshll.u32 %s597_s18, 4  ;;  %s343_s19 = int_to_ptr.vmem [resolvable:$true] %s342_s19 }
  0x33   :  { %399 = vmatpush3.msra.mxu0 %v96_v0  ;;  %v92_v5 = vld [vmem:[#allocation5 + $0x58] sm:$0xff]  ;;  %430 = vmatprep.mubr.f32.mxu0 %v79_v4  ;;  %v91_v6 = vld [vmem:[#allocation5 + $0x50] sm:$0xff]  ;;  %v90_v7 = vld [vmem:[#allocation5 + $0x48] sm:$0xff]  ;;  %s563_s20 = scalar_lea.vmem %s343_s19, 256  ;;  %p568_p7 = scmp.lt.s32.totalorder %s343_s19, %s343_s19 }
  0x34   :  { %400 = vmatprep.subr.mxu0 %v95_v1  ;;  %v89_v8 = vld [vmem:[#allocation5 + $0x40] sm:$0xff]  ;;  %v88_v9 = vld [vmem:[#allocation5 + $0x38] sm:$0xff]  ;;  %v87_v10 = vld [vmem:[#allocation5 + $0x30] sm:$0xff]  ;;  %p564_p6 = scmp.ne.s32.totalorder %s343_s19, %s563_s20  ;;  %p569_p8 = scmp.lt.s32.totalorder %s563_s20, %s563_s20 }
  0x35   :  { %401 = vmatpush3.msra.mxu0 %v95_v1  ;;  %v86_v11 = vld [vmem:[#allocation5 + $0x28] sm:$0xff]  ;;  %v85_v12 = vld [vmem:[#allocation5 + $0x20] sm:$0xff]  ;;  %v84_v13 = vld [vmem:[#allocation5 + $0x18] sm:$0xff] }
  0x36   :  { %402 = vmatprep.subr.mxu0 %v94_v2  ;;  %v83_v14 = vld [vmem:[#allocation5 + $0x10] sm:$0xff]  ;;  %v82_v15 = vld [vmem:[#allocation5 + $0x8] sm:$0xff]  ;;  %v81_v16 = vld [vmem:[#allocation5] sm:$0xff]  ;;  %p570_p9 = por %p569_p8, %p568_p7 }
  0x37   :  { %403 = vmatpush3.msra.mxu0 %v94_v2  ;;  %v80_v17 = vld [vmem:[#allocation2 + $0x8] sm:$0xff]  ;;  %v247_v19 = vld [vmem:[#allocation7 + $0x70] sm:$0xff]  ;;  %v246_v20 = vld [vmem:[#allocation7 + $0x68] sm:$0xff] }
  0x38   :  { %404 = vmatprep.subr.mxu0 %v93_v3  ;;  %v248_v18 = vld [vmem:[#allocation7 + $0x78] sm:$0xff]  ;;  %v245_v21 = vld [vmem:[#allocation7 + $0x60] sm:$0xff]  ;;  %v243_v23 = vld [vmem:[#allocation7 + $0x50] sm:$0xff]  ;;  %p571_p10 = pnand %p570_p9, %p564_p6 }
  0x39   :  { %405 = vmatpush3.msra.mxu0 %v93_v3  ;;  %433 = vmatprep.subr.mxu1 %v248_v18  ;;  %v244_v22 = vld [vmem:[#allocation7 + $0x58] sm:$0xff]  ;;  %v242_v24 = vld [vmem:[#allocation7 + $0x48] sm:$0xff]  ;;  %v241_v25 = vld [vmem:[#allocation7 + $0x40] sm:$0xff] }
  0x3a   :  { %406 = vmatprep.subr.mxu0 %v92_v5  ;;  %434 = vmatpush3.msra.mxu1 %v248_v18  ;;  %v240_v26 = vld [vmem:[#allocation7 + $0x38] sm:$0xff]  ;;  %v239_v27 = vld [vmem:[#allocation7 + $0x30] sm:$0xff]  ;;  %v238_v28 = vld [vmem:[#allocation7 + $0x28] sm:$0xff] }
  0x3b   :  { %407 = vmatpush3.msra.mxu0 %v92_v5  ;;  %435 = vmatprep.subr.mxu1 %v247_v19  ;;  %v237_v29 = vld [vmem:[#allocation7 + $0x20] sm:$0xff]  ;;  %v236_v30 = vld [vmem:[#allocation7 + $0x18] sm:$0xff]  ;;  %v235_v31 = vld [vmem:[#allocation7 + $0x10] sm:$0xff] }
  0x3c   :  { %408 = vmatprep.subr.mxu0 %v91_v6  ;;  %436 = vmatpush3.msra.mxu1 %v247_v19  ;;  %v234_v32 = vld [vmem:[#allocation7 + $0x8] sm:$0xff]  ;;  %v233_v33 = vld [vmem:[#allocation7] sm:$0xff]  ;;  %v356_v34 = vld [vmem:[%s671_s2] ss:$0 sm:$0xff] }
  0x3d   :  { %409 = vmatpush3.msra.mxu0 %v91_v6  ;;  %437 = vmatprep.subr.mxu1 %v246_v20 }
  0x3e   :  { %410 = vmatprep.subr.mxu0 %v90_v7  ;;  %438 = vmatpush3.msra.mxu1 %v246_v20 }
  0x3f   :  { %411 = vmatpush3.msra.mxu0 %v90_v7  ;;  %439 = vmatprep.subr.mxu1 %v245_v21 }
  0x40   :  { %412 = vmatprep.subr.mxu0 %v89_v8  ;;  %440 = vmatpush3.msra.mxu1 %v245_v21 }
  0x41   :  { %413 = vmatpush3.msra.mxu0 %v89_v8  ;;  %441 = vmatprep.subr.mxu1 %v244_v22 }
  0x42   :  { %414 = vmatprep.subr.mxu0 %v88_v9  ;;  %442 = vmatpush3.msra.mxu1 %v244_v22 }
  0x43   :  { %415 = vmatpush3.msra.mxu0 %v88_v9  ;;  %443 = vmatprep.subr.mxu1 %v243_v23 }
  0x44   :  { %416 = vmatprep.subr.mxu0 %v87_v10  ;;  %444 = vmatpush3.msra.mxu1 %v243_v23 }
  0x45   :  { %417 = vmatpush3.msra.mxu0 %v87_v10  ;;  %445 = vmatprep.subr.mxu1 %v242_v24 }
  0x46   :  { %418 = vmatprep.subr.mxu0 %v86_v11  ;;  %446 = vmatpush3.msra.mxu1 %v242_v24 }
  0x47   :  { %419 = vmatpush3.msra.mxu0 %v86_v11  ;;  %447 = vmatprep.subr.mxu1 %v241_v25 }
  0x48   :  { %420 = vmatprep.subr.mxu0 %v85_v12  ;;  %448 = vmatpush3.msra.mxu1 %v241_v25  ;;  %v361_v25 = vld [vmem:[%s673_s4] ss:$0 sm:$0xff] }
  0x49   :  { %421 = vmatpush3.msra.mxu0 %v85_v12  ;;  %449 = vmatprep.subr.mxu1 %v240_v26 }
  0x4a   :  { %422 = vmatprep.subr.mxu0 %v84_v13  ;;  %450 = vmatpush3.msra.mxu1 %v240_v26 }
  0x4b   :  { %423 = vmatpush3.msra.mxu0 %v84_v13  ;;  %451 = vmatprep.subr.mxu1 %v239_v27 }
  0x4c   :  { %424 = vmatprep.subr.mxu0 %v83_v14  ;;  %452 = vmatpush3.msra.mxu1 %v239_v27  ;;  %v332_v27 = vld [vmem:[#allocation8 + $0x8] sm:$0xff] }
  0x4d   :  { %425 = vmatpush3.msra.mxu0 %v83_v14  ;;  %453 = vmatprep.subr.mxu1 %v238_v28 }
  0x4e   :  { %426 = vmatprep.subr.mxu0 %v82_v15  ;;  %454 = vmatpush3.msra.mxu1 %v238_v28 }
  0x4f   :  { %427 = vmatpush3.msra.mxu0 %v82_v15  ;;  %455 = vmatprep.subr.mxu1 %v237_v29 }
  0x50   :  { %428 = vmatprep.subr.mxu0 %v81_v16  ;;  %456 = vmatpush3.msra.mxu1 %v237_v29 }
  0x51   :  { %429 = vmatpush3.msra.mxu0 %v81_v16  ;;  %457 = vmatprep.subr.mxu1 %v236_v30 }
  0x52   :  { %431 = vmatmul.mubr.f32.vlgmr.msra.gmra.mxu0 %v80_v17  ;;  %458 = vmatpush3.msra.mxu1 %v236_v30  ;;  %v331_v30 = vld [vmem:[#allocation8] sm:$0xff] }
  0x53   :  { %459 = vmatprep.subr.mxu1 %v235_v31 }
  0x54   :  { %460 = vmatpush3.msra.mxu1 %v235_v31 }
  0x55   :  { %461 = vmatprep.subr.mxu1 %v234_v32 }
  0x56   :  { %462 = vmatpush3.msra.mxu1 %v234_v32 }
  0x57   :  { %463 = vmatprep.subr.mxu1 %v233_v33 }
  0x58   :  { %464 = vmatpush3.msra.mxu1 %v233_v33 }
 0x112   :  { %v432_v35 = vpop.f32.mrf.mxu0 }
 0x113   :  { %v176_v36 = vadd.f32 %v432_v35, %v356_v34 }
 0x114   :  { %v170_v37 = vpop.f32.mrf.mxu0 }
 0x115   :  { %v182_v38 = vmul.f32 0.70710677, %v176_v36  ;;  %v171_v39 = vadd.f32 %v356_v34, %v170_v37  ;;  %v180_v22 = vmul.f32 0.5, %v176_v36 }
 0x117   :  { %v184_v40 = vand.u32 2147483647, %v182_v38  ;;  %v181_v41 = vmul.f32 0.70710677, %v171_v39  ;;  %vm224_vm0 = vcmp.lt.f32.partialorder %v182_v38, 0.0  ;;  %v179_v20 = vmul.f32 0.5, %v171_v39 }
 0x119   :  { %v186_v42 = vmul.f32 0.3275911, %v184_v40  ;;  %v183_v43 = vand.u32 2147483647, %v181_v41  ;;  %v212_v47 = vmul.f32 %v184_v40, %v184_v40  ;;  %vm223_vm1 = vcmp.lt.f32.partialorder %v181_v41, 0.0 }
 0x11b   :  { %v188_v44 = vadd.f32 1.0, %v186_v42  ;;  %v185_v45 = vmul.f32 0.3275911, %v183_v43  ;;  %v211_v48 = vmul.f32 %v183_v43, %v183_v43  ;;  %v214_v49 = vsub.f32 0.0, %v212_v47 }
 0x11d   :  { %475 = vrcp.f32 %v188_v44  ;;  %v187_v46 = vadd.f32 1.0, %v185_v45  ;;  %v213_v51 = vsub.f32 0.0, %v211_v48  ;;  %v217_v52 = vmul.f32 1.442695, %v214_v49 }
 0x11f   :  { %477 = vrcp.f32 %v187_v46  ;;  %v215_v56 = vmul.f32 1.442695, %v213_v51 }
 0x120   :  { %479 = vpow2.f32 %v217_v52 }
 0x121   :  { %481 = vpow2.f32 %v215_v56 }
 0x12a   :  { %v476_v50 = vpop.eup %475 }
 0x12b   :  { %v194_v53 = vmul.f32 1.0614054, %v476_v50 }
 0x12c   :  { %v478_v54 = vpop.eup %477 }
 0x12d   :  { %v358_v55 = vadd.f32 -1.4531521, %v194_v53  ;;  %v193_v57 = vmul.f32 1.0614054, %v478_v54  ;;  %v480_v7 = vpop.eup %479 }
 0x12e   :  { %v482_v11 = vpop.eup %481 }
 0x12f   :  { %v198_v58 = vmul.f32 %v476_v50, %v358_v55  ;;  %v357_v59 = vadd.f32 -1.4531521, %v193_v57 }
 0x131   :  { %v200_v60 = vadd.f32 1.4214138, %v198_v58  ;;  %v197_v61 = vmul.f32 %v478_v54, %v357_v59 }
 0x133   :  { %v202_v62 = vmul.f32 %v476_v50, %v200_v60  ;;  %v199_v63 = vadd.f32 1.4214138, %v197_v61 }
 0x135   :  { %v360_v0 = vadd.f32 -0.28449672, %v202_v62  ;;  %v201_v1 = vmul.f32 %v478_v54, %v199_v63 }
 0x137   :  { %v206_v2 = vmul.f32 %v476_v50, %v360_v0  ;;  %v359_v3 = vadd.f32 -0.28449672, %v201_v1 }
 0x139   :  { %v208_v4 = vadd.f32 0.2548296, %v206_v2  ;;  %v205_v5 = vmul.f32 %v478_v54, %v359_v3 }
 0x13b   :  { %v210_v6 = vmul.f32 %v476_v50, %v208_v4  ;;  %v207_v8 = vadd.f32 0.2548296, %v205_v5 }
 0x13d   :  { %v220_v9 = vmul.f32 %v480_v7, %v210_v6  ;;  %v209_v10 = vmul.f32 %v478_v54, %v207_v8 }
 0x13f   :  { %v222_v12 = vsub.f32 1.0, %v220_v9  ;;  %v219_v13 = vmul.f32 %v482_v11, %v209_v10 }
 0x141   :  { %v226_v14 = vsub.f32 0.0, %v222_v12  ;;  %v221_v15 = vsub.f32 1.0, %v219_v13 }
 0x143   :  { %v228_v16 = vsel %vm224_vm0, %v226_v14, %v222_v12  ;;  %v225_v17 = vsub.f32 0.0, %v221_v15 }
 0x144   :  { %v230_v19 = vadd.f32 1.0, %v228_v16 }
 0x145   :  { %v227_v18 = vsel %vm223_vm1, %v225_v17, %v221_v15 }
 0x146   :  { %v229_v21 = vadd.f32 1.0, %v227_v18  ;;  %v232_v24 = vmul.f32 %v230_v19, %v180_v22 }
 0x148   :  { %v231_v23 = vmul.f32 %v229_v21, %v179_v20 }
 0x14a   :  { %465 = vmatprep.mubr.f32.mxu1 %v231_v23 }
 0x14b   :  { %466 = vmatmul.mubr.f32.vlgmr.msra.gmra.mxu1 %v232_v24 }
 0x20b   :  { %v467_v26 = vpop.f32.mrf.mxu1 }
 0x20c   :  { %v328_v28 = vadd.f32 %v467_v26, %v361_v25 }
 0x20d   :  { %v322_v29 = vpop.f32.mrf.mxu1 }
 0x20e   :  { %v334_v31 = vadd.f32 %v332_v27, %v328_v28  ;;  %v323_v32 = vadd.f32 %v361_v25, %v322_v29 }
 0x210   :  { %336 = vst [vmem:[#allocation10 + $0x8] sm:$0xff] %v334_v31  ;;  %v333_v33 = vadd.f32 %v331_v30, %v323_v32 }
 0x212   :  { %335 = vst [vmem:[#allocation10] sm:$0xff] %v333_v33 }
 0x213   :  { %574 = shalt.err (!%p571_p10)
}
 0x214   :  { %348 = dma.vmem_to_hbm [thread:$0]  %s343_s19, 256, %s675_s6, [#allocation4], %s593_s26, %s593_s26, %s594_s27  }
 0x215   :  { %589 = dma.done.wait [#allocation4], 256  }
 0x216   :  { %590 = vsyncadd [#allocation4], 4294967040 }
 0x217   :  { %352 = vsyncpa [#allocation3], 1 }
 0x218   :  { %353 = vsyncpa [#allocation6], 1 }
 0x219   :  { %354 = vsyncpa [#allocation9], 1 }
 0x21a   :  { %355 = vsyncpa [#allocation4], 1 }

</bundles_post_ra>
